<compile_context>
chip_gen: v6e
topology: v6e:2x2x1
jax: 0.10.0
libtpu: 0.0.40
codegen_flags: <defaults>
</compile_context>

<pallas_src>
import functools

import jax
import jax.numpy as jnp
from jax.experimental import pallas as pl
from jax.experimental.pallas import tpu as pltpu


def _round_up(x, m):
    return (x + m - 1) // m * m


# ----------------------------- fast sine (VALU) ------------------------------

_TWO_PI = 6.283185307179586
_INV_TWO_PI = 0.15915494309189535


def _fast_sin(x):
    """Range-reduce to [-pi, pi] + odd degree-11 polynomial (Horner in x^2).

    Max abs error ~5e-4 at |r| = pi, well inside this kernel's bf16-matmul
    tolerance, at a fraction of jnp.sin's VALU polynomial length.  The VALU is
    the binding unit of this kernel on v5e/v6e/v7x, so this is a direct win."""
    r = x - _TWO_PI * jnp.floor(x * _INV_TWO_PI + 0.5)
    r2 = r * r
    p = -1.0 / 39916800.0
    p = p * r2 + (1.0 / 362880.0)
    p = p * r2 + (-1.0 / 5040.0)
    p = p * r2 + (1.0 / 120.0)
    p = p * r2 + (-1.0 / 6.0)
    p = p * r2 + 1.0
    return r * p


# ------------------------------- Pallas kernel --------------------------------

def _dmm_decoder_kernel(n_hidden, n_sub, sub, x_ref, w_relu_ref, *refs):
    """refs = ([W_i bf16 [in,out], bw_i f32 [2,out]] * n_hidden, W_out, b_out, out).

    The batch block is split into `n_sub` independent sub-tiles of `sub` rows;
    independence lets the scheduler overlap the next sub-tile's MXU dot under the
    current sub-tile's VALU-bound activation.  Activations are carried in bf16."""
    out_ref = refs[-1]

    # Load + cast input sub-tiles once (bf16 MXU operands).
    hs = [x_ref[pl.ds(j * sub, sub), :].astype(jnp.bfloat16) for j in range(n_sub)]

    idx = 0
    for li in range(n_hidden):
        w = refs[idx][...]                                 # [in, out] bf16
        bw = refs[idx + 1][...]                            # [2, out]  f32
        idx += 2
        b = bw[0:1, :]
        w_sin = bw[1:2, :]
        w_relu = w_relu_ref[li]                            # f32 scalar from SMEM

        nxt = []
        for j in range(n_sub):
            # weight-normed Linear: bf16 x bf16 -> f32 accumulation on the MXU
            z = jnp.dot(hs[j], w, preferred_element_type=jnp.float32) + b
            # ReLU_SIRENs: w_relu * relu(z) + sin(w_sin * z)   (f32 on the VPU)
            a = w_relu * jnp.maximum(z, 0.0) + _fast_sin(w_sin * z)
            nxt.append(a.astype(jnp.bfloat16))             # bf16 inter-layer carry
        hs = nxt

    w_out = refs[idx][...]                                 # [last_hidden, 128] bf16
    b_out = refs[idx + 1][...]                             # [1, 128]           f32
    for j in range(n_sub):
        o = jnp.dot(hs[j], w_out, preferred_element_type=jnp.float32) + b_out
        out_ref[pl.ds(j * sub, sub), :] = o.astype(out_ref.dtype)  # bf16 lane-dense store


# --------------------------- one-time weight prep ----------------------------

def prepare_params(params):
    """Hoisted, call-once parameter prep: weight-norm reparam W = g*V/||V||,
    transpose folding, bf16 cast, bias/w_sin packing, lane padding of the output
    projection to a 128-wide slab."""
    hidden = []
    w_relu = []
    for lyr in params["hidden"]:
        v_w, g = lyr["v_w"], lyr["g"]                          # [out, in], [out]
        scale = g / jnp.sqrt(jnp.sum(v_w * v_w, axis=1) + 1e-12)
        w_eff_t = v_w.T * scale[None, :]                       # [in, out], transpose folded
        bw = jnp.stack([lyr["b"], lyr["w_sin"]], axis=0)       # [2, out]
        hidden.append(dict(w=w_eff_t.astype(jnp.bfloat16),
                           bw=bw.astype(jnp.float32)))
        w_relu.append(jnp.reshape(lyr["w_relu"], ()))
    w_relu = jnp.stack(w_relu).astype(jnp.float32)             # [n_hidden]

    v_dim, last_hidden = params["w_out"].shape
    out_pad = _round_up(max(v_dim, 128), 128)                  # lane-dense output width
    w_out_t = jnp.zeros((last_hidden, out_pad), jnp.float32)
    w_out_t = w_out_t.at[:, :v_dim].set(params["w_out"].T)
    b_out = jnp.zeros((1, out_pad), jnp.float32)
    b_out = b_out.at[:, :v_dim].set(params["b_out"][None, :])

    return dict(hidden=hidden, w_relu=w_relu,
                w_out=w_out_t.astype(jnp.bfloat16),
                b_out=b_out.astype(jnp.float32))


# ------------------------------ tile selection --------------------------------

def _choose_tiles(B):
    """(block_rows, sub_rows).  block_rows is the streamed grid tile, sub_rows the
    in-kernel compute sub-tile (vreg-sized); block_rows % sub_rows == 0.
    The constraint is the 64-entry vreg file (same on v5e/v6e/v7x), plus making
    sure the 'parallel' grid has >= 2 steps for v7x's two TensorCores."""
    if B <= 64:
        tb = _round_up(max(B, 8), 8)          # single block == full padded array
        return tb, tb
    if B <= 256:
        tb = _round_up((B + 1) // 2, 16)      # >= 2 grid steps; 16-aligned for bf16 store
        return tb, tb
    if B <= 512:
        return 256, 128                        # 2 grid steps, 128-row compute sub-tiles
    return 512, 128                            # big B: amortize per-grid-step overhead


# ------------------------------ forward wrapper --------------------------------

def dmm_decoder_forward(v, prepped):
    """v: [B, v_dim] f32 -> delta: [1, B, v_dim] f32 (matches PyTorch broadcasting)."""
    B, v_dim = v.shape
    out_pad = prepped["w_out"].shape[1]
    n_hidden = len(prepped["hidden"])

    TB, SUB = _choose_tiles(B)
    n_sub = TB // SUB
    B_pad = _round_up(B, TB)
    x = v.astype(jnp.float32)
    if B_pad != B:
        x = jnp.pad(x, ((0, B_pad - B), (0, 0)))

    # Note: x is intentionally NOT lane-padded to 128 -- the kernel is compute-bound
    # and padding would only quadruple input DMA bytes.
    args = [x, prepped["w_relu"]]
    in_specs = [
        pl.BlockSpec((TB, v_dim), lambda i: (i, 0)),                 # streamed activations
        pl.BlockSpec(memory_space=pltpu.MemorySpace.SMEM),           # all w_relu scalars
    ]
    for lyr in prepped["hidden"]:
        args += [lyr["w"], lyr["bw"]]
        in_specs += [
            pl.BlockSpec(lyr["w"].shape, lambda i: (0, 0)),          # VMEM-resident weights
            pl.BlockSpec(lyr["bw"].shape, lambda i: (0, 0)),
        ]
    args += [prepped["w_out"], prepped["b_out"]]
    in_specs += [
        pl.BlockSpec(prepped["w_out"].shape, lambda i: (0, 0)),
        pl.BlockSpec(prepped["b_out"].shape, lambda i: (0, 0)),
    ]

    out = pl.pallas_call(
        functools.partial(_dmm_decoder_kernel, n_hidden, n_sub, SUB),
        out_shape=jax.ShapeDtypeStruct((B_pad, out_pad), jnp.bfloat16),  # bf16 writeback
        grid=(B_pad // TB,),
        in_specs=in_specs,
        out_specs=pl.BlockSpec((TB, out_pad), lambda i: (i, 0)),     # lane-dense store
        compiler_params=pltpu.CompilerParams(
            dimension_semantics=("parallel",)),                       # v7x 2-TC split
    )(*args)

    # PyTorch ReLU_SIRENs broadcasting adds a leading singleton axis; restore f32.
    return out[:B, :v_dim].astype(jnp.float32)[None]


# --------------------------- pure-JAX reference ------------------------------

def dmm_decoder_reference(v, params):
    h = v.astype(jnp.float32)
    for lyr in params["hidden"]:
        norm = jnp.sqrt(jnp.sum(lyr["v_w"] * lyr["v_w"], axis=1, keepdims=True) + 1e-12)
        w_eff = lyr["g"][:, None] * lyr["v_w"] / norm              # [out, in]
        h = h @ w_eff.T + lyr["b"]
        w_sin = lyr["w_sin"].reshape(1, 1, -1)
        w_relu = lyr["w_relu"].reshape(1, 1, 1)
        h = w_relu * jnp.maximum(h, 0.0) + jnp.sin(w_sin * h)      # -> [1, B, D]
    return h @ params["w_out"].T + params["b_out"]                 # [1, B, v_dim]


# ------------------------------ param init ----------------------------------

def init_params(key, v_dim, layer_dim):
    hidden = []
    in_d = v_dim
    for out_d in layer_dim:
        key, k1, k2, k3, k4, k5 = jax.random.split(key, 6)
        v_w = jax.random.normal(k1, (out_d, in_d), jnp.float32) * 0.05
        g = jax.random.uniform(k2, (out_d,), jnp.float32, 0.5, 1.5)
        b = jax.random.normal(k3, (out_d,), jnp.float32) * 0.01
        w_sin = jax.random.normal(k4, (out_d,), jnp.float32)       # nn.Embedding ~ N(0,1)
        w_relu = jax.random.normal(k5, (1,), jnp.float32)
        hidden.append(dict(v_w=v_w, g=g, b=b, w_sin=w_sin, w_relu=w_relu))
        in_d = out_d
    key, k1, k2 = jax.random.split(key, 3)
    w_out = jax.random.normal(k1, (v_dim, layer_dim[-1]), jnp.float32) * 0.05
    b_out = jax.random.normal(k2, (v_dim,), jnp.float32) * 0.01
    return dict(hidden=hidden, w_out=w_out, b_out=b_out)


# --------------------------------- main --------------------------------------

if __name__ == "__main__":
    key = jax.random.PRNGKey(0)

    # small shapes consistent with the module (DMM_Decoder(v_dim, layer_dim))
    v_dim = 32
    layer_dim = [128] * 4
    batch = 16

    key, kp, kx = jax.random.split(key, 3)
    params = init_params(kp, v_dim, layer_dim)
    v = jax.random.normal(kx, (batch, v_dim), jnp.float32)

    prepped = prepare_params(params)          # one-time weight prep (hoisted out of forward)
    forward = jax.jit(dmm_decoder_forward)

    delta = jax.block_until_ready(forward(v, prepped))

    ref = dmm_decoder_reference(v, params)
    assert delta.shape == ref.shape == (1, batch, v_dim)
    # bf16 MXU operands, bf16 inter-layer carry, bf16 output store and the
    # polynomial sin -> loosened tolerance vs the f32/jnp.sin reference.
    assert jnp.allclose(delta, ref, atol=5e-2, rtol=5e-2), \
        float(jnp.max(jnp.abs(delta - ref)))

    print("KERNEL_OK")
</pallas_src>

<mosaic_0001>
module attributes {stable_mosaic.version = 11 : i64} {
  func.func @_dmm_decoder_kernel(%arg0: i32, %arg1: memref<16x32xf32, #tpu.memory_space<vmem>>, %arg2: memref<4xf32, #tpu.memory_space<smem>>, %arg3: memref<32x128xbf16, #tpu.memory_space<vmem>>, %arg4: memref<2x128xf32, #tpu.memory_space<vmem>>, %arg5: memref<128x128xbf16, #tpu.memory_space<vmem>>, %arg6: memref<2x128xf32, #tpu.memory_space<vmem>>, %arg7: memref<128x128xbf16, #tpu.memory_space<vmem>>, %arg8: memref<2x128xf32, #tpu.memory_space<vmem>>, %arg9: memref<128x128xbf16, #tpu.memory_space<vmem>>, %arg10: memref<2x128xf32, #tpu.memory_space<vmem>>, %arg11: memref<128x128xbf16, #tpu.memory_space<vmem>>, %arg12: memref<1x128xf32, #tpu.memory_space<vmem>>, %arg13: memref<16x128xbf16, #tpu.memory_space<vmem>>) attributes {dimension_semantics = [#tpu.dimension_semantics<parallel>], iteration_bounds = array<i64: 1>, scalar_prefetch = 0 : i64, scratch_operands = 0 : i64, tpu.core_type = #tpu.core_type<tc>, window_params = [{transform_indices = @transform_0, window_bounds = array<i64: 16, 32>}, {transform_indices = @transform_1, window_bounds = array<i64: 4>}, {pipeline_mode = #tpu.pipeline_mode<synchronous>, transform_indices = @transform_2, window_bounds = array<i64: 32, 128>}, {pipeline_mode = #tpu.pipeline_mode<synchronous>, transform_indices = @transform_3, window_bounds = array<i64: 2, 128>}, {pipeline_mode = #tpu.pipeline_mode<synchronous>, transform_indices = @transform_4, window_bounds = array<i64: 128, 128>}, {pipeline_mode = #tpu.pipeline_mode<synchronous>, transform_indices = @transform_5, window_bounds = array<i64: 2, 128>}, {pipeline_mode = #tpu.pipeline_mode<synchronous>, transform_indices = @transform_6, window_bounds = array<i64: 128, 128>}, {pipeline_mode = #tpu.pipeline_mode<synchronous>, transform_indices = @transform_7, window_bounds = array<i64: 2, 128>}, {pipeline_mode = #tpu.pipeline_mode<synchronous>, transform_indices = @transform_8, window_bounds = array<i64: 128, 128>}, {pipeline_mode = #tpu.pipeline_mode<synchronous>, transform_indices = @transform_9, window_bounds = array<i64: 2, 128>}, {pipeline_mode = #tpu.pipeline_mode<synchronous>, transform_indices = @transform_10, window_bounds = array<i64: 128, 128>}, {pipeline_mode = #tpu.pipeline_mode<synchronous>, transform_indices = @transform_11, window_bounds = array<i64: 1, 128>}, {transform_indices = @transform_12, window_bounds = array<i64: 16, 128>}]} {
    %c0 = arith.constant 0 : index
    %c0_0 = arith.constant 0 : index
    %0 = vector.load %arg1[%c0, %c0_0] : memref<16x32xf32, #tpu.memory_space<vmem>>, vector<16x32xf32>
    %1 = arith.truncf %0 : vector<16x32xf32> to vector<16x32xbf16>
    %c0_1 = arith.constant 0 : index
    %c0_2 = arith.constant 0 : index
    %2 = vector.load %arg3[%c0_1, %c0_2] : memref<32x128xbf16, #tpu.memory_space<vmem>>, vector<32x128xbf16>
    %c0_3 = arith.constant 0 : index
    %c0_4 = arith.constant 0 : index
    %3 = vector.load %arg4[%c0_3, %c0_4] : memref<2x128xf32, #tpu.memory_space<vmem>>, vector<2x128xf32>
    %4 = vector.extract_strided_slice %3 {offsets = [0, 0], sizes = [1, 128], strides = [1, 1]} : vector<2x128xf32> to vector<1x128xf32>
    %5 = vector.extract_strided_slice %3 {offsets = [1, 0], sizes = [1, 128], strides = [1, 1]} : vector<2x128xf32> to vector<1x128xf32>
    %c0_5 = arith.constant 0 : index
    %6 = memref.load %arg2[%c0_5] : memref<4xf32, #tpu.memory_space<smem>>
    %cst = arith.constant dense<0.000000e+00> : vector<16x128xf32>
    %7 = tpu.matmul %1, %2, %cst {dimension_numbers = #tpu.dot_dimension_numbers<[1], [0], [0], [1], [0, 0, 1, 1], [], []>} : vector<16x32xbf16>, vector<32x128xbf16>, vector<16x128xf32> -> vector<16x128xf32>
    %8 = vector.broadcast %4 : vector<1x128xf32> to vector<16x128xf32>
    %9 = arith.addf %7, %8 : vector<16x128xf32>
    %cst_6 = arith.constant 0.000000e+00 : f32
    %10 = vector.broadcast %cst_6 : f32 to vector<16x128xf32>
    %11 = arith.maximumf %9, %10 : vector<16x128xf32>
    %12 = vector.broadcast %6 : f32 to vector<16x128xf32>
    %13 = arith.mulf %12, %11 : vector<16x128xf32>
    %14 = vector.broadcast %5 : vector<1x128xf32> to vector<16x128xf32>
    %15 = arith.mulf %14, %9 : vector<16x128xf32>
    %cst_7 = arith.constant 0.159154937 : f32
    %16 = vector.broadcast %cst_7 : f32 to vector<16x128xf32>
    %17 = arith.mulf %15, %16 : vector<16x128xf32>
    %cst_8 = arith.constant 5.000000e-01 : f32
    %18 = vector.broadcast %cst_8 : f32 to vector<16x128xf32>
    %19 = arith.addf %17, %18 : vector<16x128xf32>
    %20 = math.floor %19 : vector<16x128xf32>
    %cst_9 = arith.constant 6.28318548 : f32
    %21 = vector.broadcast %cst_9 : f32 to vector<16x128xf32>
    %22 = arith.mulf %21, %20 : vector<16x128xf32>
    %23 = arith.subf %15, %22 : vector<16x128xf32>
    %24 = arith.mulf %23, %23 : vector<16x128xf32>
    %cst_10 = arith.constant -2.50521079E-8 : f32
    %25 = vector.broadcast %cst_10 : f32 to vector<16x128xf32>
    %26 = arith.mulf %25, %24 : vector<16x128xf32>
    %cst_11 = arith.constant 2.75573188E-6 : f32
    %27 = vector.broadcast %cst_11 : f32 to vector<16x128xf32>
    %28 = arith.addf %26, %27 : vector<16x128xf32>
    %29 = arith.mulf %28, %24 : vector<16x128xf32>
    %cst_12 = arith.constant -1.98412701E-4 : f32
    %30 = vector.broadcast %cst_12 : f32 to vector<16x128xf32>
    %31 = arith.addf %29, %30 : vector<16x128xf32>
    %32 = arith.mulf %31, %24 : vector<16x128xf32>
    %cst_13 = arith.constant 0.00833333377 : f32
    %33 = vector.broadcast %cst_13 : f32 to vector<16x128xf32>
    %34 = arith.addf %32, %33 : vector<16x128xf32>
    %35 = arith.mulf %34, %24 : vector<16x128xf32>
    %cst_14 = arith.constant -0.166666672 : f32
    %36 = vector.broadcast %cst_14 : f32 to vector<16x128xf32>
    %37 = arith.addf %35, %36 : vector<16x128xf32>
    %38 = arith.mulf %37, %24 : vector<16x128xf32>
    %cst_15 = arith.constant 1.000000e+00 : f32
    %39 = vector.broadcast %cst_15 : f32 to vector<16x128xf32>
    %40 = arith.addf %38, %39 : vector<16x128xf32>
    %41 = arith.mulf %23, %40 : vector<16x128xf32>
    %42 = arith.addf %13, %41 : vector<16x128xf32>
    %43 = arith.truncf %42 : vector<16x128xf32> to vector<16x128xbf16>
    %c0_16 = arith.constant 0 : index
    %c0_17 = arith.constant 0 : index
    %44 = vector.load %arg5[%c0_16, %c0_17] : memref<128x128xbf16, #tpu.memory_space<vmem>>, vector<128x128xbf16>
    %c0_18 = arith.constant 0 : index
    %c0_19 = arith.constant 0 : index
    %45 = vector.load %arg6[%c0_18, %c0_19] : memref<2x128xf32, #tpu.memory_space<vmem>>, vector<2x128xf32>
    %46 = vector.extract_strided_slice %45 {offsets = [0, 0], sizes = [1, 128], strides = [1, 1]} : vector<2x128xf32> to vector<1x128xf32>
    %47 = vector.extract_strided_slice %45 {offsets = [1, 0], sizes = [1, 128], strides = [1, 1]} : vector<2x128xf32> to vector<1x128xf32>
    %c1 = arith.constant 1 : index
    %48 = memref.load %arg2[%c1] : memref<4xf32, #tpu.memory_space<smem>>
    %cst_20 = arith.constant dense<0.000000e+00> : vector<16x128xf32>
    %49 = tpu.matmul %43, %44, %cst_20 {dimension_numbers = #tpu.dot_dimension_numbers<[1], [0], [0], [1], [0, 0, 1, 1], [], []>} : vector<16x128xbf16>, vector<128x128xbf16>, vector<16x128xf32> -> vector<16x128xf32>
    %50 = vector.broadcast %46 : vector<1x128xf32> to vector<16x128xf32>
    %51 = arith.addf %49, %50 : vector<16x128xf32>
    %cst_21 = arith.constant 0.000000e+00 : f32
    %52 = vector.broadcast %cst_21 : f32 to vector<16x128xf32>
    %53 = arith.maximumf %51, %52 : vector<16x128xf32>
    %54 = vector.broadcast %48 : f32 to vector<16x128xf32>
    %55 = arith.mulf %54, %53 : vector<16x128xf32>
    %56 = vector.broadcast %47 : vector<1x128xf32> to vector<16x128xf32>
    %57 = arith.mulf %56, %51 : vector<16x128xf32>
    %cst_22 = arith.constant 0.159154937 : f32
    %58 = vector.broadcast %cst_22 : f32 to vector<16x128xf32>
    %59 = arith.mulf %57, %58 : vector<16x128xf32>
    %cst_23 = arith.constant 5.000000e-01 : f32
    %60 = vector.broadcast %cst_23 : f32 to vector<16x128xf32>
    %61 = arith.addf %59, %60 : vector<16x128xf32>
    %62 = math.floor %61 : vector<16x128xf32>
    %cst_24 = arith.constant 6.28318548 : f32
    %63 = vector.broadcast %cst_24 : f32 to vector<16x128xf32>
    %64 = arith.mulf %63, %62 : vector<16x128xf32>
    %65 = arith.subf %57, %64 : vector<16x128xf32>
    %66 = arith.mulf %65, %65 : vector<16x128xf32>
    %cst_25 = arith.constant -2.50521079E-8 : f32
    %67 = vector.broadcast %cst_25 : f32 to vector<16x128xf32>
    %68 = arith.mulf %67, %66 : vector<16x128xf32>
    %cst_26 = arith.constant 2.75573188E-6 : f32
    %69 = vector.broadcast %cst_26 : f32 to vector<16x128xf32>
    %70 = arith.addf %68, %69 : vector<16x128xf32>
    %71 = arith.mulf %70, %66 : vector<16x128xf32>
    %cst_27 = arith.constant -1.98412701E-4 : f32
    %72 = vector.broadcast %cst_27 : f32 to vector<16x128xf32>
    %73 = arith.addf %71, %72 : vector<16x128xf32>
    %74 = arith.mulf %73, %66 : vector<16x128xf32>
    %cst_28 = arith.constant 0.00833333377 : f32
    %75 = vector.broadcast %cst_28 : f32 to vector<16x128xf32>
    %76 = arith.addf %74, %75 : vector<16x128xf32>
    %77 = arith.mulf %76, %66 : vector<16x128xf32>
    %cst_29 = arith.constant -0.166666672 : f32
    %78 = vector.broadcast %cst_29 : f32 to vector<16x128xf32>
    %79 = arith.addf %77, %78 : vector<16x128xf32>
    %80 = arith.mulf %79, %66 : vector<16x128xf32>
    %cst_30 = arith.constant 1.000000e+00 : f32
    %81 = vector.broadcast %cst_30 : f32 to vector<16x128xf32>
    %82 = arith.addf %80, %81 : vector<16x128xf32>
    %83 = arith.mulf %65, %82 : vector<16x128xf32>
    %84 = arith.addf %55, %83 : vector<16x128xf32>
    %85 = arith.truncf %84 : vector<16x128xf32> to vector<16x128xbf16>
    %c0_31 = arith.constant 0 : index
    %c0_32 = arith.constant 0 : index
    %86 = vector.load %arg7[%c0_31, %c0_32] : memref<128x128xbf16, #tpu.memory_space<vmem>>, vector<128x128xbf16>
    %c0_33 = arith.constant 0 : index
    %c0_34 = arith.constant 0 : index
    %87 = vector.load %arg8[%c0_33, %c0_34] : memref<2x128xf32, #tpu.memory_space<vmem>>, vector<2x128xf32>
    %88 = vector.extract_strided_slice %87 {offsets = [0, 0], sizes = [1, 128], strides = [1, 1]} : vector<2x128xf32> to vector<1x128xf32>
    %89 = vector.extract_strided_slice %87 {offsets = [1, 0], sizes = [1, 128], strides = [1, 1]} : vector<2x128xf32> to vector<1x128xf32>
    %c2 = arith.constant 2 : index
    %90 = memref.load %arg2[%c2] : memref<4xf32, #tpu.memory_space<smem>>
    %cst_35 = arith.constant dense<0.000000e+00> : vector<16x128xf32>
    %91 = tpu.matmul %85, %86, %cst_35 {dimension_numbers = #tpu.dot_dimension_numbers<[1], [0], [0], [1], [0, 0, 1, 1], [], []>} : vector<16x128xbf16>, vector<128x128xbf16>, vector<16x128xf32> -> vector<16x128xf32>
    %92 = vector.broadcast %88 : vector<1x128xf32> to vector<16x128xf32>
    %93 = arith.addf %91, %92 : vector<16x128xf32>
    %cst_36 = arith.constant 0.000000e+00 : f32
    %94 = vector.broadcast %cst_36 : f32 to vector<16x128xf32>
    %95 = arith.maximumf %93, %94 : vector<16x128xf32>
    %96 = vector.broadcast %90 : f32 to vector<16x128xf32>
    %97 = arith.mulf %96, %95 : vector<16x128xf32>
    %98 = vector.broadcast %89 : vector<1x128xf32> to vector<16x128xf32>
    %99 = arith.mulf %98, %93 : vector<16x128xf32>
    %cst_37 = arith.constant 0.159154937 : f32
    %100 = vector.broadcast %cst_37 : f32 to vector<16x128xf32>
    %101 = arith.mulf %99, %100 : vector<16x128xf32>
    %cst_38 = arith.constant 5.000000e-01 : f32
    %102 = vector.broadcast %cst_38 : f32 to vector<16x128xf32>
    %103 = arith.addf %101, %102 : vector<16x128xf32>
    %104 = math.floor %103 : vector<16x128xf32>
    %cst_39 = arith.constant 6.28318548 : f32
    %105 = vector.broadcast %cst_39 : f32 to vector<16x128xf32>
    %106 = arith.mulf %105, %104 : vector<16x128xf32>
    %107 = arith.subf %99, %106 : vector<16x128xf32>
    %108 = arith.mulf %107, %107 : vector<16x128xf32>
    %cst_40 = arith.constant -2.50521079E-8 : f32
    %109 = vector.broadcast %cst_40 : f32 to vector<16x128xf32>
    %110 = arith.mulf %109, %108 : vector<16x128xf32>
    %cst_41 = arith.constant 2.75573188E-6 : f32
    %111 = vector.broadcast %cst_41 : f32 to vector<16x128xf32>
    %112 = arith.addf %110, %111 : vector<16x128xf32>
    %113 = arith.mulf %112, %108 : vector<16x128xf32>
    %cst_42 = arith.constant -1.98412701E-4 : f32
    %114 = vector.broadcast %cst_42 : f32 to vector<16x128xf32>
    %115 = arith.addf %113, %114 : vector<16x128xf32>
    %116 = arith.mulf %115, %108 : vector<16x128xf32>
    %cst_43 = arith.constant 0.00833333377 : f32
    %117 = vector.broadcast %cst_43 : f32 to vector<16x128xf32>
    %118 = arith.addf %116, %117 : vector<16x128xf32>
    %119 = arith.mulf %118, %108 : vector<16x128xf32>
    %cst_44 = arith.constant -0.166666672 : f32
    %120 = vector.broadcast %cst_44 : f32 to vector<16x128xf32>
    %121 = arith.addf %119, %120 : vector<16x128xf32>
    %122 = arith.mulf %121, %108 : vector<16x128xf32>
    %cst_45 = arith.constant 1.000000e+00 : f32
    %123 = vector.broadcast %cst_45 : f32 to vector<16x128xf32>
    %124 = arith.addf %122, %123 : vector<16x128xf32>
    %125 = arith.mulf %107, %124 : vector<16x128xf32>
    %126 = arith.addf %97, %125 : vector<16x128xf32>
    %127 = arith.truncf %126 : vector<16x128xf32> to vector<16x128xbf16>
    %c0_46 = arith.constant 0 : index
    %c0_47 = arith.constant 0 : index
    %128 = vector.load %arg9[%c0_46, %c0_47] : memref<128x128xbf16, #tpu.memory_space<vmem>>, vector<128x128xbf16>
    %c0_48 = arith.constant 0 : index
    %c0_49 = arith.constant 0 : index
    %129 = vector.load %arg10[%c0_48, %c0_49] : memref<2x128xf32, #tpu.memory_space<vmem>>, vector<2x128xf32>
    %130 = vector.extract_strided_slice %129 {offsets = [0, 0], sizes = [1, 128], strides = [1, 1]} : vector<2x128xf32> to vector<1x128xf32>
    %131 = vector.extract_strided_slice %129 {offsets = [1, 0], sizes = [1, 128], strides = [1, 1]} : vector<2x128xf32> to vector<1x128xf32>
    %c3 = arith.constant 3 : index
    %132 = memref.load %arg2[%c3] : memref<4xf32, #tpu.memory_space<smem>>
    %cst_50 = arith.constant dense<0.000000e+00> : vector<16x128xf32>
    %133 = tpu.matmul %127, %128, %cst_50 {dimension_numbers = #tpu.dot_dimension_numbers<[1], [0], [0], [1], [0, 0, 1, 1], [], []>} : vector<16x128xbf16>, vector<128x128xbf16>, vector<16x128xf32> -> vector<16x128xf32>
    %134 = vector.broadcast %130 : vector<1x128xf32> to vector<16x128xf32>
    %135 = arith.addf %133, %134 : vector<16x128xf32>
    %cst_51 = arith.constant 0.000000e+00 : f32
    %136 = vector.broadcast %cst_51 : f32 to vector<16x128xf32>
    %137 = arith.maximumf %135, %136 : vector<16x128xf32>
    %138 = vector.broadcast %132 : f32 to vector<16x128xf32>
    %139 = arith.mulf %138, %137 : vector<16x128xf32>
    %140 = vector.broadcast %131 : vector<1x128xf32> to vector<16x128xf32>
    %141 = arith.mulf %140, %135 : vector<16x128xf32>
    %cst_52 = arith.constant 0.159154937 : f32
    %142 = vector.broadcast %cst_52 : f32 to vector<16x128xf32>
    %143 = arith.mulf %141, %142 : vector<16x128xf32>
    %cst_53 = arith.constant 5.000000e-01 : f32
    %144 = vector.broadcast %cst_53 : f32 to vector<16x128xf32>
    %145 = arith.addf %143, %144 : vector<16x128xf32>
    %146 = math.floor %145 : vector<16x128xf32>
    %cst_54 = arith.constant 6.28318548 : f32
    %147 = vector.broadcast %cst_54 : f32 to vector<16x128xf32>
    %148 = arith.mulf %147, %146 : vector<16x128xf32>
    %149 = arith.subf %141, %148 : vector<16x128xf32>
    %150 = arith.mulf %149, %149 : vector<16x128xf32>
    %cst_55 = arith.constant -2.50521079E-8 : f32
    %151 = vector.broadcast %cst_55 : f32 to vector<16x128xf32>
    %152 = arith.mulf %151, %150 : vector<16x128xf32>
    %cst_56 = arith.constant 2.75573188E-6 : f32
    %153 = vector.broadcast %cst_56 : f32 to vector<16x128xf32>
    %154 = arith.addf %152, %153 : vector<16x128xf32>
    %155 = arith.mulf %154, %150 : vector<16x128xf32>
    %cst_57 = arith.constant -1.98412701E-4 : f32
    %156 = vector.broadcast %cst_57 : f32 to vector<16x128xf32>
    %157 = arith.addf %155, %156 : vector<16x128xf32>
    %158 = arith.mulf %157, %150 : vector<16x128xf32>
    %cst_58 = arith.constant 0.00833333377 : f32
    %159 = vector.broadcast %cst_58 : f32 to vector<16x128xf32>
    %160 = arith.addf %158, %159 : vector<16x128xf32>
    %161 = arith.mulf %160, %150 : vector<16x128xf32>
    %cst_59 = arith.constant -0.166666672 : f32
    %162 = vector.broadcast %cst_59 : f32 to vector<16x128xf32>
    %163 = arith.addf %161, %162 : vector<16x128xf32>
    %164 = arith.mulf %163, %150 : vector<16x128xf32>
    %cst_60 = arith.constant 1.000000e+00 : f32
    %165 = vector.broadcast %cst_60 : f32 to vector<16x128xf32>
    %166 = arith.addf %164, %165 : vector<16x128xf32>
    %167 = arith.mulf %149, %166 : vector<16x128xf32>
    %168 = arith.addf %139, %167 : vector<16x128xf32>
    %169 = arith.truncf %168 : vector<16x128xf32> to vector<16x128xbf16>
    %c0_61 = arith.constant 0 : index
    %c0_62 = arith.constant 0 : index
    %170 = vector.load %arg11[%c0_61, %c0_62] : memref<128x128xbf16, #tpu.memory_space<vmem>>, vector<128x128xbf16>
    %c0_63 = arith.constant 0 : index
    %c0_64 = arith.constant 0 : index
    %171 = vector.load %arg12[%c0_63, %c0_64] : memref<1x128xf32, #tpu.memory_space<vmem>>, vector<1x128xf32>
    %cst_65 = arith.constant dense<0.000000e+00> : vector<16x128xf32>
    %172 = tpu.matmul %169, %170, %cst_65 {dimension_numbers = #tpu.dot_dimension_numbers<[1], [0], [0], [1], [0, 0, 1, 1], [], []>} : vector<16x128xbf16>, vector<128x128xbf16>, vector<16x128xf32> -> vector<16x128xf32>
    %173 = vector.broadcast %171 : vector<1x128xf32> to vector<16x128xf32>
    %174 = arith.addf %172, %173 : vector<16x128xf32>
    %175 = arith.truncf %174 : vector<16x128xf32> to vector<16x128xbf16>
    %c0_66 = arith.constant 0 : index
    %c0_67 = arith.constant 0 : index
    %176 = vector.load %arg13[%c0_66, %c0_67] : memref<16x128xbf16, #tpu.memory_space<vmem>>, vector<16x128xbf16>
    tpu.vector_store %arg13[%c0_66, %c0_67], %175 {strides = array<i32>} : memref<16x128xbf16, #tpu.memory_space<vmem>>, vector<16x128xbf16>,
    return
  }
  func.func @transform_0(%arg0: i32) -> (i32, i32) {
    %c0_i32 = arith.constant 0 : i32
    %c0_i32_0 = arith.constant 0 : i32
    return %arg0, %c0_i32 : i32, i32
  }
  func.func @transform_1(%arg0: i32) -> i32 {
    %c0_i32 = arith.constant 0 : i32
    %c0_i32_0 = arith.constant 0 : i32
    return %c0_i32 : i32
  }
  func.func @transform_2(%arg0: i32) -> (i32, i32) {
    %c0_i32 = arith.constant 0 : i32
    %c0_i32_0 = arith.constant 0 : i32
    %c0_i32_1 = arith.constant 0 : i32
    return %c0_i32, %c0_i32_0 : i32, i32
  }
  func.func @transform_3(%arg0: i32) -> (i32, i32) {
    %c0_i32 = arith.constant 0 : i32
    %c0_i32_0 = arith.constant 0 : i32
    %c0_i32_1 = arith.constant 0 : i32
    return %c0_i32, %c0_i32_0 : i32, i32
  }
  func.func @transform_4(%arg0: i32) -> (i32, i32) {
    %c0_i32 = arith.constant 0 : i32
    %c0_i32_0 = arith.constant 0 : i32
    %c0_i32_1 = arith.constant 0 : i32
    return %c0_i32, %c0_i32_0 : i32, i32
  }
  func.func @transform_5(%arg0: i32) -> (i32, i32) {
    %c0_i32 = arith.constant 0 : i32
    %c0_i32_0 = arith.constant 0 : i32
    %c0_i32_1 = arith.constant 0 : i32
    return %c0_i32, %c0_i32_0 : i32, i32
  }
  func.func @transform_6(%arg0: i32) -> (i32, i32) {
    %c0_i32 = arith.constant 0 : i32
    %c0_i32_0 = arith.constant 0 : i32
    %c0_i32_1 = arith.constant 0 : i32
    return %c0_i32, %c0_i32_0 : i32, i32
  }
  func.func @transform_7(%arg0: i32) -> (i32, i32) {
    %c0_i32 = arith.constant 0 : i32
    %c0_i32_0 = arith.constant 0 : i32
    %c0_i32_1 = arith.constant 0 : i32
    return %c0_i32, %c0_i32_0 : i32, i32
  }
  func.func @transform_8(%arg0: i32) -> (i32, i32) {
    %c0_i32 = arith.constant 0 : i32
    %c0_i32_0 = arith.constant 0 : i32
    %c0_i32_1 = arith.constant 0 : i32
    return %c0_i32, %c0_i32_0 : i32, i32
  }
  func.func @transform_9(%arg0: i32) -> (i32, i32) {
    %c0_i32 = arith.constant 0 : i32
    %c0_i32_0 = arith.constant 0 : i32
    %c0_i32_1 = arith.constant 0 : i32
    return %c0_i32, %c0_i32_0 : i32, i32
  }
  func.func @transform_10(%arg0: i32) -> (i32, i32) {
    %c0_i32 = arith.constant 0 : i32
    %c0_i32_0 = arith.constant 0 : i32
    %c0_i32_1 = arith.constant 0 : i32
    return %c0_i32, %c0_i32_0 : i32, i32
  }
  func.func @transform_11(%arg0: i32) -> (i32, i32) {
    %c0_i32 = arith.constant 0 : i32
    %c0_i32_0 = arith.constant 0 : i32
    %c0_i32_1 = arith.constant 0 : i32
    return %c0_i32, %c0_i32_0 : i32, i32
  }
  func.func @transform_12(%arg0: i32) -> (i32, i32) {
    %c0_i32 = arith.constant 0 : i32
    %c0_i32_0 = arith.constant 0 : i32
    return %arg0, %c0_i32 : i32, i32
  }
}

</mosaic_0001>

<bundles_post_ra>
// kernel: dmm_decoder_forward.1
= control target key start
LH: loop header
LB: loop body
LE: loop exit
PB: predicated region body
PF: predicated region fallthrough
CT: control target
= control target key end

     0   :  { %17 = vsyncpa [#allocation3], 0  ;;  %s1448_s0 = inlined_call_operand.hbm [shape: f32[16,32], index: 0, kind: input, shape index: {}]   ;;  %s1449_s1 = inlined_call_operand.vmem [shape: f32[4], index: 1, kind: input, shape index: {}]   ;;  %s1450_s2 = inlined_call_operand.hbm [shape: bf16[32,128], index: 2, kind: input, shape index: {}]   ;;  %s1451_s3 = inlined_call_operand.vmem [shape: f32[2,128], index: 3, kind: input, shape index: {}]   ;;  %s1452_s4 = inlined_call_operand.hbm [shape: bf16[128,128], index: 4, kind: input, shape index: {}]   ;;  %s1453_s5 = inlined_call_operand.vmem [shape: f32[2,128], index: 5, kind: input, shape index: {}]   ;;  %s1454_s6 = inlined_call_operand.hbm [shape: bf16[128,128], index: 6, kind: input, shape index: {}]   ;;  %s1455_s7 = inlined_call_operand.vmem [shape: f32[2,128], index: 7, kind: input, shape index: {}]   ;;  %s1456_s8 = inlined_call_operand.hbm [shape: bf16[128,128], index: 8, kind: input, shape index: {}]   ;;  %s1457_s9 = inlined_call_operand.vmem [shape: f32[2,128], index: 9, kind: input, shape index: {}]   ;;  %s1458_s10 = inlined_call_operand.hbm [shape: bf16[128,128], index: 10, kind: input, shape index: {}]   ;;  %s1459_s11 = inlined_call_operand.hbm [shape: f32[1,128], index: 11, kind: input, shape index: {}]   ;;  %s1460_s12 = inlined_call_operand.vmem [shape: bf16[16,128], index: 12, kind: output, shape index: {}]  }
   0x1   :  { %18 = vsyncpa [#allocation4], 0 }
   0x2   :  { %19 = vsyncpa [#allocation7], 0 }
   0x3   :  { %20 = vsyncpa [#allocation10], 0 }
   0x4   :  { %21 = vsyncpa [#allocation13], 0  ;;  %s1259_s21 = smov [#allocation6]  }
   0x5   :  { %s49_s22 = sshll.u32 %s1259_s21, 4  ;;  %s50_s22 = int_to_ptr.vmem [resolvable:$true] %s49_s22 }
   0x6   :  { %s1105_s23 = scalar_lea.vmem %s50_s22, 256  ;;  %p1110_p1 = scmp.lt.s32.totalorder %s50_s22, %s50_s22 }
   0x7   :  { %p1106_p0 = scmp.ne.s32.totalorder %s50_s22, %s1105_s23  ;;  %p1111_p2 = scmp.lt.s32.totalorder %s1105_s23, %s1105_s23 }
   0x9   :  { %p1112_p3 = por %p1111_p2, %p1110_p1 }
   0xb   :  { %p1113_p4 = pnand %p1112_p3, %p1106_p0 }
   0xd   :  { %1116 = shalt.err (!%p1113_p4)
}
   0xe   :  { %s1260_s24 = smov 64   ;;  %s1261_s25 = smov 4  }
   0xf   :  { %55 = dma.hbm_to_vmem [thread:$0]  %s1450_s2, 256, %s50_s22, [#allocation7], %s1260_s24, %s1260_s24, %s1261_s25  }
  0x10   :  { %s1262_s28 = smov [#allocation9]   ;;  %s1263_s30 = smov [#allocation12]  }
  0x11   :  { %s77_s29 = sshll.u32 %s1262_s28, 4  ;;  %s105_s13 = sshll.u32 %s1263_s30, 4  ;;  %s78_s29 = int_to_ptr.vmem [resolvable:$true] %s77_s29  ;;  %s106_s13 = int_to_ptr.vmem [resolvable:$true] %s105_s13 }
  0x12   :  { %s1125_s14 = scalar_lea.vmem %s78_s29, 1024  ;;  %p1130_p6 = scmp.lt.s32.totalorder %s78_s29, %s78_s29 }
  0x13   :  { %p1126_p5 = scmp.ne.s32.totalorder %s78_s29, %s1125_s14  ;;  %p1131_p7 = scmp.lt.s32.totalorder %s1125_s14, %s1125_s14 }
  0x15   :  { %p1132_p8 = por %p1131_p7, %p1130_p6 }
  0x17   :  { %p1133_p9 = pnand %p1132_p8, %p1126_p5 }
  0x19   :  { %1136 = shalt.err (!%p1133_p9)
}
  0x1a   :  { %83 = dma.hbm_to_vmem [thread:$0]  %s1454_s6, 1024, %s78_s29, [#allocation10], %s1260_s24, %s1260_s24, %s1261_s25  }
  0x1b   :  { %s1145_s2 = scalar_lea.vmem %s106_s13, 1024  ;;  %p1150_p11 = scmp.lt.s32.totalorder %s106_s13, %s106_s13 }
  0x1c   :  { %p1146_p10 = scmp.ne.s32.totalorder %s106_s13, %s1145_s2  ;;  %p1151_p12 = scmp.lt.s32.totalorder %s1145_s2, %s1145_s2 }
  0x1e   :  { %p1152_p13 = por %p1151_p12, %p1150_p11 }
  0x20   :  { %p1153_p0 = pnand %p1152_p13, %p1146_p10 }
  0x22   :  { %1156 = shalt.err (!%p1153_p0)
}
  0x23   :  { %111 = dma.hbm_to_vmem [thread:$0]  %s1458_s10, 1024, %s106_s13, [#allocation13], %s1260_s24, %s1260_s24, %s1261_s25  }
  0x24   :  { %s1264_s19 = smov [#allocation2]  }
  0x25   :  { %s27_s20 = sshll.u32 %s1264_s19, 4  ;;  %s28_s20 = int_to_ptr.vmem [resolvable:$true] %s27_s20 }
  0x26   :  { %s1165_s21 = scalar_lea.vmem %s28_s20, 256  ;;  %p1170_p2 = scmp.lt.s32.totalorder %s28_s20, %s28_s20 }
  0x27   :  { %p1166_p1 = scmp.ne.s32.totalorder %s28_s20, %s1165_s21  ;;  %p1171_p3 = scmp.lt.s32.totalorder %s1165_s21, %s1165_s21 }
  0x29   :  { %p1172_p4 = por %p1171_p3, %p1170_p2 }
  0x2b   :  { %p1173_p5 = pnand %p1172_p4, %p1166_p1 }
  0x2d   :  { %1176 = shalt.err (!%p1173_p5)
}
  0x2e   :  { %s1265_s6 = smov 128   ;;  %s1266_s22 = smov 8  }
  0x2f   :  { %33 = dma.hbm_to_vmem [thread:$0]  %s1448_s0, 256, %s28_s20, [#allocation3], %s1265_s6, %s1265_s6, %s1266_s22  }
  0x30   :  { %s40_s10 = sshll.u32 %s1449_s1, 4  ;;  %s41_s10 = int_to_ptr.vmem [resolvable:$true] %s40_s10 }
  0x31   :  { %s1177_s29 = scalar_lea.vmem %s41_s10, 16  ;;  %p1182_p7 = scmp.lt.s32.totalorder %s41_s10, %s41_s10 }
  0x32   :  { %p1178_p6 = scmp.ne.s32.totalorder %s41_s10, %s1177_s29  ;;  %p1183_p8 = scmp.lt.s32.totalorder %s1177_s29, %s1177_s29 }
  0x34   :  { %p1184_p9 = por %p1183_p8, %p1182_p7 }
  0x36   :  { %p1185_p10 = pnand %p1184_p9, %p1178_p6 }
  0x38   :  { %1188 = shalt.err (!%p1185_p10)
}
  0x39   :  { %s1267_s30 = smov [#allocation5]   ;;  %s1268_s13 = smov [#allocation8]  }
  0x3a   :  { %43 = dma.vmem_to_smem %s41_s10, 16, %s1267_s30, [#allocation4]  }
  0x3b   :  { %s63_s14 = sshll.u32 %s1268_s13, 4  ;;  %s1269_s15 = smov [#allocation11]   ;;  %s64_s14 = int_to_ptr.vmem [resolvable:$true] %s63_s14 }
  0x3c   :  { %s91_s16 = sshll.u32 %s1269_s15, 4  ;;  %s1197_s0 = scalar_lea.vmem %s64_s14, 1024  ;;  %s92_s16 = int_to_ptr.vmem [resolvable:$true] %s91_s16 }
  0x3d   :  { %p1198_p11 = scmp.ne.s32.totalorder %s64_s14, %s1197_s0  ;;  %p1202_p12 = scmp.lt.s32.totalorder %s64_s14, %s64_s14 }
  0x3e   :  { %p1203_p13 = scmp.lt.s32.totalorder %s1197_s0, %s1197_s0 }
  0x40   :  { %p1204_p0 = por %p1203_p13, %p1202_p12 }
  0x42   :  { %p1205_p1 = pnand %p1204_p0, %p1198_p11 }
  0x44   :  { %1208 = shalt.err (!%p1205_p1)
}
  0x45   :  { %69 = dma.hbm_to_vmem [thread:$0]  %s1452_s4, 1024, %s64_s14, [#allocation7], %s1260_s24, %s1260_s24, %s1261_s25  }
  0x46   :  { %s1217_s17 = scalar_lea.vmem %s92_s16, 1024  ;;  %p1222_p3 = scmp.lt.s32.totalorder %s92_s16, %s92_s16 }
  0x47   :  { %p1218_p2 = scmp.ne.s32.totalorder %s92_s16, %s1217_s17  ;;  %p1223_p4 = scmp.lt.s32.totalorder %s1217_s17, %s1217_s17 }
  0x49   :  { %p1224_p5 = por %p1223_p4, %p1222_p3 }
  0x4b   :  { %p1225_p6 = pnand %p1224_p5, %p1218_p2 }
  0x4d   :  { %1228 = shalt.err (!%p1225_p6)
}
  0x4e   :  { %97 = dma.hbm_to_vmem [thread:$0]  %s1456_s8, 1024, %s92_s16, [#allocation10], %s1260_s24, %s1260_s24, %s1261_s25  }
  0x4f   :  { %s1270_s20 = smov [#allocation14]  }
  0x50   :  { %s118_s21 = sshll.u32 %s1270_s20, 4  ;;  %s119_s21 = int_to_ptr.vmem [resolvable:$true] %s118_s21 }
  0x51   :  { %s1237_s6 = scalar_lea.vmem %s119_s21, 16  ;;  %s1241_s4 = scalar_lea.vmem %s119_s21, 32 }
  0x52   :  { %p1238_p7 = scmp.ne.s32.totalorder %s119_s21, %s1237_s6  ;;  %p1242_p8 = scmp.lt.s32.totalorder %s119_s21, %s119_s21 }
  0x53   :  { %p1243_p9 = scmp.lt.s32.totalorder %s1241_s4, %s1237_s6 }
  0x55   :  { %p1244_p10 = por %p1243_p9, %p1242_p8 }
  0x57   :  { %p1245_p11 = pnand %p1244_p10, %p1238_p7 }
  0x59   :  { %1248 = shalt.err (!%p1245_p11)
}
  0x5a   :  { %121 = dma.hbm_to_vmem [thread:$0]  %s1459_s11, 16, %s119_s21, [#allocation13]  }
  0x5b   :  { %1249 = dma.done.wait [#allocation3], 256  }
  0x5c   :  { %1250 = vsyncadd [#allocation3], 4294967040 }
  0x5d   :  { %1251 = dma.done.wait [#allocation4], 16  }
  0x5e   :  { %1252 = vsyncadd [#allocation4], 4294967280 }
  0x5f   :  { %1253 = dma.done.wait [#allocation7], 1280  }
  0x60   :  { %1254 = vsyncadd [#allocation7], 4294966016 }
  0x61   :  { %1255 = dma.done.wait [#allocation10], 2048  }
  0x62   :  { %1256 = vsyncadd [#allocation10], 4294965248 }
  0x63   :  { %1257 = dma.done.wait [#allocation13], 1040  }
  0x64   :  { %1258 = vsyncadd [#allocation13], 4294966256 }
  0x65   :  { %146 = sfence }
  0x66   :  { %v1063_v0 = vld [vmem:[#allocation6 + $0x8] sm:$0xff]   ;;  %v1271_v1 = vmov 0.0   ;;  %v1064_v2 = vld [vmem:[#allocation6] sm:$0xff]   ;;  %vm1272_vm0 = vmmov 0   ;;  %v148_v3 = vld [vmem:[#allocation2] sm:$0xff]  ;;  %vm173_vm1 = vcmask 261120   ;;  %v157_v14 = vlaneseq }
  0x67   :  { %961 = vmatprep.subr.bf16.mxu0 %v1271_v1  ;;  %969 = vmatprep.subr.bf16.mxu1 %v1271_v1  ;;  %v149_v4 = vld [vmem:[#allocation2 + $0x8] sm:$0xff]  ;;  %v1065_v6 = vld [vmem:[#allocation8 + $0x38] sm:$0xff]   ;;  %v1066_v7 = vld [vmem:[#allocation8 + $0x30] sm:$0xff]  }
  0x68   :  { %962 = vmatpush3.bf16.msra.mxu0 %v1063_v0  ;;  %965 = vmatprep.mubr.msk.bf16.mxu0 %vm1272_vm0, %v1271_v1  ;;  %v150_v5 = vpack.c.bf16 %v149_v4, %v148_v3  ;;  %v1067_v8 = vld [vmem:[#allocation8 + $0x28] sm:$0xff]   ;;  %v1068_v9 = vld [vmem:[#allocation8 + $0x20] sm:$0xff]   ;;  %v1069_v10 = vld [vmem:[#allocation8 + $0x18] sm:$0xff]   ;;  %v158_v15 = vshrl.u32 %v157_v14, 7 }
  0x69   :  { %963 = vmatprep.subr.bf16.mxu0 %v1271_v1  ;;  %985 = vmatprep.mubr.msk.bf16.mxu1 %vm1272_vm0, %v1271_v1  ;;  %v1070_v11 = vld [vmem:[#allocation8 + $0x10] sm:$0xff]   ;;  %v1071_v12 = vld [vmem:[#allocation8 + $0x8] sm:$0xff]   ;;  %v1072_v13 = vld [vmem:[#allocation8] sm:$0xff]  }
  0x6a   :  { %970 = vmatpush3.bf16.msra.mxu1 %v1065_v6  ;;  %v1395_v16 = vsub.s32 0, %v158_v15  ;;  %v155_v17 = vld [vmem:[%s1451_s3] sm:$0x3]  ;;  %v1400_v18 = vsub.s32 1, %v158_v15  ;;  %s156_s3 = sld [smem:[#allocation5]]  ;;  %v1079_v14 = vld [vmem:[#allocation9 + $0x8] sm:$0xff]  }
  0x6b   :  { %971 = vmatprep.subr.bf16.mxu1 %v1271_v1  ;;  %v1080_v15 = vld [vmem:[#allocation9] sm:$0xff]  }
  0x6c   :  { %964 = vmatpush3.bf16.msra.mxu0 %v1064_v2  ;;  %v160_v19 = vrot.slane %v155_v17, %v1395_v16  ;;  %v226_v20 = vrot.slane %v155_v17, %v1400_v18  ;;  %v282_v17 = vld [vmem:[%s1453_s5] sm:$0x3]  ;;  %s877_s5 = sld [smem:[#allocation5 + $0x1]] }
  0x6d   :  { %989 = vmatprep.subr.bf16.mxu0 %v1271_v1 }
  0x6e   :  { %972 = vmatpush3.bf16.msra.mxu1 %v1066_v7 }
  0x6f   :  { %966 = vmatmul.mubr.msk.bf16.vlgmr.msra.gmra.mxu0 %vm173_vm1, %v150_v5  ;;  %973 = vmatprep.subr.bf16.mxu1 %v1271_v1 }
  0x70   :  { %1005 = vmatprep.mubr.msk.bf16.mxu0 %vm1272_vm0, %v1271_v1  ;;  %v220_v62 = vstv %s156_s3 }
  0x72   :  { %974 = vmatpush3.bf16.msra.mxu1 %v1067_v8  ;;  %v1073_v8 = vld [vmem:[#allocation9 + $0x38] sm:$0xff]  }
  0x73   :  { %975 = vmatprep.subr.bf16.mxu1 %v1271_v1  ;;  %990 = vmatpush3.bf16.msra.mxu0 %v1073_v8  ;;  %v1081_v8 = vld [vmem:[#allocation11 + $0x38] sm:$0xff]  }
  0x74   :  { %991 = vmatprep.subr.bf16.mxu0 %v1271_v1 }
  0x76   :  { %976 = vmatpush3.bf16.msra.mxu1 %v1068_v9  ;;  %v1074_v9 = vld [vmem:[#allocation9 + $0x30] sm:$0xff]  }
  0x77   :  { %977 = vmatprep.subr.bf16.mxu1 %v1271_v1  ;;  %992 = vmatpush3.bf16.msra.mxu0 %v1074_v9  ;;  %v1082_v9 = vld [vmem:[#allocation11 + $0x30] sm:$0xff]  }
  0x78   :  { %993 = vmatprep.subr.bf16.mxu0 %v1271_v1 }
  0x7a   :  { %978 = vmatpush3.bf16.msra.mxu1 %v1069_v10  ;;  %v1075_v10 = vld [vmem:[#allocation9 + $0x28] sm:$0xff]  }
  0x7b   :  { %979 = vmatprep.subr.bf16.mxu1 %v1271_v1  ;;  %994 = vmatpush3.bf16.msra.mxu0 %v1075_v10  ;;  %v1083_v10 = vld [vmem:[#allocation11 + $0x28] sm:$0xff]  }
  0x7c   :  { %995 = vmatprep.subr.bf16.mxu0 %v1271_v1 }
  0x7e   :  { %980 = vmatpush3.bf16.msra.mxu1 %v1070_v11  ;;  %v1076_v11 = vld [vmem:[#allocation9 + $0x20] sm:$0xff]  }
  0x7f   :  { %981 = vmatprep.subr.bf16.mxu1 %v1271_v1  ;;  %996 = vmatpush3.bf16.msra.mxu0 %v1076_v11  ;;  %v1084_v11 = vld [vmem:[#allocation11 + $0x20] sm:$0xff]  }
  0x80   :  { %997 = vmatprep.subr.bf16.mxu0 %v1271_v1 }
  0x82   :  { %982 = vmatpush3.bf16.msra.mxu1 %v1071_v12  ;;  %v1077_v12 = vld [vmem:[#allocation9 + $0x18] sm:$0xff]  }
  0x83   :  { %983 = vmatprep.subr.bf16.mxu1 %v1271_v1  ;;  %998 = vmatpush3.bf16.msra.mxu0 %v1077_v12  ;;  %v1085_v12 = vld [vmem:[#allocation11 + $0x18] sm:$0xff]  }
  0x84   :  { %999 = vmatprep.subr.bf16.mxu0 %v1271_v1 }
  0x86   :  { %984 = vmatpush3.bf16.msra.mxu1 %v1072_v13  ;;  %v1078_v13 = vld [vmem:[#allocation9 + $0x10] sm:$0xff]  }
  0x87   :  { %1009 = vmatprep.subr.bf16.mxu1 %v1271_v1  ;;  %1000 = vmatpush3.bf16.msra.mxu0 %v1078_v13  ;;  %v1086_v13 = vld [vmem:[#allocation11 + $0x10] sm:$0xff]  }
  0x88   :  { %1001 = vmatprep.subr.bf16.mxu0 %v1271_v1 }
  0x8b   :  { %1002 = vmatpush3.bf16.msra.mxu0 %v1079_v14  ;;  %v1087_v14 = vld [vmem:[#allocation11 + $0x8] sm:$0xff]  }
  0x8c   :  { %1003 = vmatprep.subr.bf16.mxu0 %v1271_v1 }
  0x8f   :  { %1004 = vmatpush3.bf16.msra.mxu0 %v1080_v15  ;;  %v1088_v15 = vld [vmem:[#allocation11] sm:$0xff]  }
  0x90   :  { %1029 = vmatprep.subr.bf16.mxu0 %v1271_v1 }
 0x12f   :  { %v211_v21 = vpop.f32.mrf.mxu0 }
 0x130   :  { %v212_v22 = vadd.f32 %v211_v21, %v160_v19 }
 0x131   :  { %v967_v23 = vpop.f32.mrf.mxu0 }
 0x132   :  { %v227_v24 = vmul.f32 %v226_v20, %v212_v22  ;;  %v218_v59 = vmax.f32 %v212_v22, 0.0 }
 0x133   :  { %v214_v25 = vpop.f32.mrf.mxu0 }
 0x134   :  { %v229_v26 = vmul.f32 0.15915494, %v227_v24  ;;  %v215_v27 = vadd.f32 %v214_v25, %v160_v19  ;;  %v221_v2 = vmul.f32 %v220_v62, %v218_v59  ;;  %v287_v19 = vrot.slane %v282_v17, %v1395_v16 }
 0x135   :  { %v968_v28 = vpop.f32.mrf.mxu0 }
 0x136   :  { %v231_v29 = vadd.f32 0.5, %v229_v26  ;;  %v228_v30 = vmul.f32 %v226_v20, %v215_v27  ;;  %v219_v60 = vmax.f32 %v215_v27, 0.0  ;;  %v385_v20 = vrot.slane %v282_v17, %v1400_v18  ;;  %v441_v17 = vld [vmem:[%s1455_s7] sm:$0x3]  ;;  %s886_s7 = sld [smem:[#allocation5 + $0x2]] }
 0x138   :  { %v233_v31 = vfloor.f32 %v231_v29  ;;  %v230_v32 = vmul.f32 0.15915494, %v228_v30  ;;  %v222_v3 = vmul.f32 %v220_v62, %v219_v60  ;;  %v379_v62 = vstv %s877_s5 }
 0x13a   :  { %v235_v33 = vmul.f32 6.2831855, %v233_v31  ;;  %v232_v34 = vadd.f32 0.5, %v230_v32 }
 0x13c   :  { %v237_v35 = vsub.f32 %v227_v24, %v235_v33  ;;  %v234_v36 = vfloor.f32 %v232_v34 }
 0x13e   :  { %v239_v37 = vmul.f32 %v237_v35, %v237_v35  ;;  %v236_v38 = vmul.f32 6.2831855, %v234_v36 }
 0x140   :  { %v241_v39 = vmul.f32 -2.5052108e-08, %v239_v37  ;;  %v238_v40 = vsub.f32 %v228_v30, %v236_v38 }
 0x142   :  { %v243_v41 = vadd.f32 2.7557319e-06, %v241_v39  ;;  %v240_v42 = vmul.f32 %v238_v40, %v238_v40 }
 0x144   :  { %v245_v43 = vmul.f32 %v243_v41, %v239_v37  ;;  %v242_v44 = vmul.f32 -2.5052108e-08, %v240_v42 }
 0x146   :  { %v247_v45 = vadd.f32 -0.0001984127, %v245_v43  ;;  %v244_v46 = vadd.f32 2.7557319e-06, %v242_v44 }
 0x148   :  { %v249_v47 = vmul.f32 %v247_v45, %v239_v37  ;;  %v246_v48 = vmul.f32 %v244_v46, %v240_v42 }
 0x14a   :  { %v251_v49 = vadd.f32 0.008333334, %v249_v47  ;;  %v248_v50 = vadd.f32 -0.0001984127, %v246_v48 }
 0x14c   :  { %v253_v51 = vmul.f32 %v251_v49, %v239_v37  ;;  %v250_v52 = vmul.f32 %v248_v50, %v240_v42 }
 0x14e   :  { %v255_v53 = vadd.f32 -0.16666667, %v253_v51  ;;  %v252_v54 = vadd.f32 0.008333334, %v250_v52 }
 0x150   :  { %v257_v55 = vmul.f32 %v255_v53, %v239_v37  ;;  %v254_v56 = vmul.f32 %v252_v54, %v240_v42 }
 0x152   :  { %v259_v57 = vadd.f32 1.0, %v257_v55  ;;  %v256_v58 = vadd.f32 -0.16666667, %v254_v56 }
 0x154   :  { %v258_v61 = vmul.f32 %v256_v58, %v240_v42  ;;  %v261_v63 = vmul.f32 %v259_v57, %v237_v35 }
 0x156   :  { %v260_v0 = vadd.f32 1.0, %v258_v61  ;;  %v263_v5 = vadd.f32 %v261_v63, %v221_v2 }
 0x158   :  { %v262_v4 = vmul.f32 %v260_v0, %v238_v40 }
 0x15a   :  { %v264_v6 = vadd.f32 %v262_v4, %v222_v3 }
 0x15c   :  { %v265_v7 = vpack.c.bf16 %v264_v6, %v263_v5 }
 0x15e   :  { %986 = vmatmul.mubr.bf16.vlgmr.msra.gmra.mxu1 %v265_v7 }
 0x15f   :  { %1025 = vmatprep.mubr.msk.bf16.mxu1 %vm1272_vm0, %v1271_v1  ;;  %1010 = vmatpush3.bf16.msra.mxu1 %v1081_v8  ;;  %v1089_v8 = vld [vmem:[#allocation12 + $0x38] sm:$0xff]  }
 0x160   :  { %1011 = vmatprep.subr.bf16.mxu1 %v1271_v1 }
 0x163   :  { %1012 = vmatpush3.bf16.msra.mxu1 %v1082_v9  ;;  %v1090_v9 = vld [vmem:[#allocation12 + $0x30] sm:$0xff]  }
 0x164   :  { %1013 = vmatprep.subr.bf16.mxu1 %v1271_v1 }
 0x167   :  { %1014 = vmatpush3.bf16.msra.mxu1 %v1083_v10  ;;  %v1091_v10 = vld [vmem:[#allocation12 + $0x28] sm:$0xff]  }
 0x168   :  { %1015 = vmatprep.subr.bf16.mxu1 %v1271_v1 }
 0x16b   :  { %1016 = vmatpush3.bf16.msra.mxu1 %v1084_v11  ;;  %v1092_v11 = vld [vmem:[#allocation12 + $0x20] sm:$0xff]  }
 0x16c   :  { %1017 = vmatprep.subr.bf16.mxu1 %v1271_v1 }
 0x16f   :  { %1018 = vmatpush3.bf16.msra.mxu1 %v1085_v12  ;;  %v1093_v12 = vld [vmem:[#allocation12 + $0x18] sm:$0xff]  }
 0x170   :  { %1019 = vmatprep.subr.bf16.mxu1 %v1271_v1 }
 0x173   :  { %1020 = vmatpush3.bf16.msra.mxu1 %v1086_v13  ;;  %v1094_v13 = vld [vmem:[#allocation12 + $0x10] sm:$0xff]  }
 0x174   :  { %1021 = vmatprep.subr.bf16.mxu1 %v1271_v1 }
 0x177   :  { %1022 = vmatpush3.bf16.msra.mxu1 %v1087_v14  ;;  %v1095_v14 = vld [vmem:[#allocation12 + $0x8] sm:$0xff]  }
 0x178   :  { %1023 = vmatprep.subr.bf16.mxu1 %v1271_v1 }
 0x17b   :  { %1024 = vmatpush3.bf16.msra.mxu1 %v1088_v15  ;;  %v1096_v15 = vld [vmem:[#allocation12] sm:$0xff]  }
 0x21e   :  { %v370_v21 = vpop.f32.mrf.mxu1 }
 0x21f   :  { %v371_v22 = vadd.f32 %v370_v21, %v287_v19 }
 0x220   :  { %v987_v23 = vpop.f32.mrf.mxu1 }
 0x221   :  { %v386_v24 = vmul.f32 %v385_v20, %v371_v22  ;;  %v377_v59 = vmax.f32 %v371_v22, 0.0 }
 0x222   :  { %v373_v25 = vpop.f32.mrf.mxu1 }
 0x223   :  { %v388_v26 = vmul.f32 0.15915494, %v386_v24  ;;  %v374_v27 = vadd.f32 %v373_v25, %v287_v19  ;;  %v380_v2 = vmul.f32 %v379_v62, %v377_v59  ;;  %v446_v19 = vrot.slane %v441_v17, %v1395_v16 }
 0x224   :  { %v988_v28 = vpop.f32.mrf.mxu1 }
 0x225   :  { %v390_v29 = vadd.f32 0.5, %v388_v26  ;;  %v387_v30 = vmul.f32 %v385_v20, %v374_v27  ;;  %v378_v60 = vmax.f32 %v374_v27, 0.0  ;;  %v544_v20 = vrot.slane %v441_v17, %v1400_v18  ;;  %v600_v17 = vld [vmem:[%s1457_s9] sm:$0x3]  ;;  %s895_s9 = sld [smem:[#allocation5 + $0x3]] }
 0x227   :  { %v392_v31 = vfloor.f32 %v390_v29  ;;  %v389_v32 = vmul.f32 0.15915494, %v387_v30  ;;  %v381_v3 = vmul.f32 %v379_v62, %v378_v60  ;;  %v538_v62 = vstv %s886_s7 }
 0x229   :  { %v394_v33 = vmul.f32 6.2831855, %v392_v31  ;;  %v391_v34 = vadd.f32 0.5, %v389_v32 }
 0x22b   :  { %v396_v35 = vsub.f32 %v386_v24, %v394_v33  ;;  %v393_v36 = vfloor.f32 %v391_v34 }
 0x22d   :  { %v398_v37 = vmul.f32 %v396_v35, %v396_v35  ;;  %v395_v38 = vmul.f32 6.2831855, %v393_v36 }
 0x22f   :  { %v400_v39 = vmul.f32 -2.5052108e-08, %v398_v37  ;;  %v397_v40 = vsub.f32 %v387_v30, %v395_v38 }
 0x231   :  { %v402_v41 = vadd.f32 2.7557319e-06, %v400_v39  ;;  %v399_v42 = vmul.f32 %v397_v40, %v397_v40 }
 0x233   :  { %v404_v43 = vmul.f32 %v402_v41, %v398_v37  ;;  %v401_v44 = vmul.f32 -2.5052108e-08, %v399_v42 }
 0x235   :  { %v406_v45 = vadd.f32 -0.0001984127, %v404_v43  ;;  %v403_v46 = vadd.f32 2.7557319e-06, %v401_v44 }
 0x237   :  { %v408_v47 = vmul.f32 %v406_v45, %v398_v37  ;;  %v405_v48 = vmul.f32 %v403_v46, %v399_v42 }
 0x239   :  { %v410_v49 = vadd.f32 0.008333334, %v408_v47  ;;  %v407_v50 = vadd.f32 -0.0001984127, %v405_v48 }
 0x23b   :  { %v412_v51 = vmul.f32 %v410_v49, %v398_v37  ;;  %v409_v52 = vmul.f32 %v407_v50, %v399_v42 }
 0x23d   :  { %v414_v53 = vadd.f32 -0.16666667, %v412_v51  ;;  %v411_v54 = vadd.f32 0.008333334, %v409_v52 }
 0x23f   :  { %v416_v55 = vmul.f32 %v414_v53, %v398_v37  ;;  %v413_v56 = vmul.f32 %v411_v54, %v399_v42 }
 0x241   :  { %v418_v57 = vadd.f32 1.0, %v416_v55  ;;  %v415_v58 = vadd.f32 -0.16666667, %v413_v56 }
 0x243   :  { %v417_v61 = vmul.f32 %v415_v58, %v399_v42  ;;  %v420_v63 = vmul.f32 %v418_v57, %v396_v35 }
 0x245   :  { %v419_v0 = vadd.f32 1.0, %v417_v61  ;;  %v422_v5 = vadd.f32 %v420_v63, %v380_v2 }
 0x247   :  { %v421_v4 = vmul.f32 %v419_v0, %v397_v40 }
 0x249   :  { %v423_v6 = vadd.f32 %v421_v4, %v381_v3 }
 0x24b   :  { %v424_v7 = vpack.c.bf16 %v423_v6, %v422_v5 }
 0x24d   :  { %1006 = vmatmul.mubr.bf16.vlgmr.msra.gmra.mxu0 %v424_v7 }
 0x24e   :  { %1045 = vmatprep.mubr.msk.bf16.mxu0 %vm1272_vm0, %v1271_v1  ;;  %1030 = vmatpush3.bf16.msra.mxu0 %v1089_v8 }
 0x24f   :  { %1031 = vmatprep.subr.bf16.mxu0 %v1271_v1 }
 0x252   :  { %1032 = vmatpush3.bf16.msra.mxu0 %v1090_v9 }
 0x253   :  { %1033 = vmatprep.subr.bf16.mxu0 %v1271_v1 }
 0x256   :  { %1034 = vmatpush3.bf16.msra.mxu0 %v1091_v10 }
 0x257   :  { %1035 = vmatprep.subr.bf16.mxu0 %v1271_v1 }
 0x25a   :  { %1036 = vmatpush3.bf16.msra.mxu0 %v1092_v11 }
 0x25b   :  { %1037 = vmatprep.subr.bf16.mxu0 %v1271_v1 }
 0x25e   :  { %1038 = vmatpush3.bf16.msra.mxu0 %v1093_v12 }
 0x25f   :  { %1039 = vmatprep.subr.bf16.mxu0 %v1271_v1 }
 0x262   :  { %1040 = vmatpush3.bf16.msra.mxu0 %v1094_v13 }
 0x263   :  { %1041 = vmatprep.subr.bf16.mxu0 %v1271_v1 }
 0x266   :  { %1042 = vmatpush3.bf16.msra.mxu0 %v1095_v14 }
 0x267   :  { %1043 = vmatprep.subr.bf16.mxu0 %v1271_v1 }
 0x26a   :  { %1044 = vmatpush3.bf16.msra.mxu0 %v1096_v15 }
 0x30d   :  { %v529_v21 = vpop.f32.mrf.mxu0 }
 0x30e   :  { %v530_v22 = vadd.f32 %v529_v21, %v446_v19 }
 0x30f   :  { %v1007_v23 = vpop.f32.mrf.mxu0 }
 0x310   :  { %v545_v24 = vmul.f32 %v544_v20, %v530_v22  ;;  %v536_v59 = vmax.f32 %v530_v22, 0.0 }
 0x311   :  { %v532_v25 = vpop.f32.mrf.mxu0 }
 0x312   :  { %v547_v26 = vmul.f32 0.15915494, %v545_v24  ;;  %v533_v27 = vadd.f32 %v532_v25, %v446_v19  ;;  %v539_v2 = vmul.f32 %v538_v62, %v536_v59  ;;  %v605_v19 = vrot.slane %v600_v17, %v1395_v16 }
 0x313   :  { %v1008_v28 = vpop.f32.mrf.mxu0  ;;  %v697_v59 = vstv %s895_s9 }
 0x314   :  { %v549_v29 = vadd.f32 0.5, %v547_v26  ;;  %v546_v30 = vmul.f32 %v544_v20, %v533_v27  ;;  %v537_v60 = vmax.f32 %v533_v27, 0.0  ;;  %v703_v20 = vrot.slane %v600_v17, %v1400_v18 }
 0x316   :  { %v551_v31 = vfloor.f32 %v549_v29  ;;  %v548_v32 = vmul.f32 0.15915494, %v546_v30  ;;  %v540_v3 = vmul.f32 %v538_v62, %v537_v60 }
 0x318   :  { %v553_v33 = vmul.f32 6.2831855, %v551_v31  ;;  %v550_v34 = vadd.f32 0.5, %v548_v32 }
 0x31a   :  { %v555_v35 = vsub.f32 %v545_v24, %v553_v33  ;;  %v552_v36 = vfloor.f32 %v550_v34 }
 0x31c   :  { %v557_v37 = vmul.f32 %v555_v35, %v555_v35  ;;  %v554_v38 = vmul.f32 6.2831855, %v552_v36 }
 0x31e   :  { %v559_v39 = vmul.f32 -2.5052108e-08, %v557_v37  ;;  %v556_v40 = vsub.f32 %v546_v30, %v554_v38 }
 0x320   :  { %v561_v41 = vadd.f32 2.7557319e-06, %v559_v39  ;;  %v558_v42 = vmul.f32 %v556_v40, %v556_v40 }
 0x322   :  { %v563_v43 = vmul.f32 %v561_v41, %v557_v37  ;;  %v560_v44 = vmul.f32 -2.5052108e-08, %v558_v42 }
 0x324   :  { %v565_v45 = vadd.f32 -0.0001984127, %v563_v43  ;;  %v562_v46 = vadd.f32 2.7557319e-06, %v560_v44 }
 0x326   :  { %v567_v47 = vmul.f32 %v565_v45, %v557_v37  ;;  %v564_v48 = vmul.f32 %v562_v46, %v558_v42 }
 0x328   :  { %v569_v49 = vadd.f32 0.008333334, %v567_v47  ;;  %v566_v50 = vadd.f32 -0.0001984127, %v564_v48 }
 0x32a   :  { %v571_v51 = vmul.f32 %v569_v49, %v557_v37  ;;  %v568_v52 = vmul.f32 %v566_v50, %v558_v42 }
 0x32c   :  { %v573_v53 = vadd.f32 -0.16666667, %v571_v51  ;;  %v570_v54 = vadd.f32 0.008333334, %v568_v52 }
 0x32e   :  { %v575_v55 = vmul.f32 %v573_v53, %v557_v37  ;;  %v572_v56 = vmul.f32 %v570_v54, %v558_v42 }
 0x330   :  { %v577_v57 = vadd.f32 1.0, %v575_v55  ;;  %v574_v58 = vadd.f32 -0.16666667, %v572_v56 }
 0x332   :  { %v576_v61 = vmul.f32 %v574_v58, %v558_v42  ;;  %v579_v63 = vmul.f32 %v577_v57, %v555_v35 }
 0x334   :  { %v578_v0 = vadd.f32 1.0, %v576_v61  ;;  %v581_v5 = vadd.f32 %v579_v63, %v539_v2 }
 0x336   :  { %v580_v4 = vmul.f32 %v578_v0, %v556_v40 }
 0x338   :  { %v582_v6 = vadd.f32 %v580_v4, %v540_v3 }
 0x33a   :  { %v583_v7 = vpack.c.bf16 %v582_v6, %v581_v5  ;;  %v904_v6 = vld [vmem:[#allocation14] ss:$0 sm:$0xff] }
 0x33c   :  { %1026 = vmatmul.mubr.bf16.vlgmr.msra.gmra.mxu1 %v583_v7 }
 0x3fc   :  { %v688_v21 = vpop.f32.mrf.mxu1 }
 0x3fd   :  { %v689_v22 = vadd.f32 %v688_v21, %v605_v19 }
 0x3fe   :  { %v1027_v23 = vpop.f32.mrf.mxu1 }
 0x3ff   :  { %v704_v24 = vmul.f32 %v703_v20, %v689_v22  ;;  %v695_v56 = vmax.f32 %v689_v22, 0.0 }
 0x400   :  { %v691_v25 = vpop.f32.mrf.mxu1 }
 0x401   :  { %v706_v26 = vmul.f32 0.15915494, %v704_v24  ;;  %v692_v27 = vadd.f32 %v691_v25, %v605_v19  ;;  %v698_v62 = vmul.f32 %v697_v59, %v695_v56 }
 0x402   :  { %v1028_v28 = vpop.f32.mrf.mxu1 }
 0x403   :  { %v708_v29 = vadd.f32 0.5, %v706_v26  ;;  %v705_v1 = vmul.f32 %v703_v20, %v692_v27  ;;  %v696_v57 = vmax.f32 %v692_v27, 0.0 }
 0x405   :  { %v710_v30 = vfloor.f32 %v708_v29  ;;  %v707_v31 = vmul.f32 0.15915494, %v705_v1  ;;  %v699_v63 = vmul.f32 %v697_v59, %v696_v57 }
 0x407   :  { %v712_v32 = vmul.f32 6.2831855, %v710_v30  ;;  %v709_v33 = vadd.f32 0.5, %v707_v31 }
 0x409   :  { %v714_v34 = vsub.f32 %v704_v24, %v712_v32  ;;  %v711_v35 = vfloor.f32 %v709_v33 }
 0x40b   :  { %v716_v36 = vmul.f32 %v714_v34, %v714_v34  ;;  %v713_v16 = vmul.f32 6.2831855, %v711_v35 }
 0x40d   :  { %v718_v37 = vmul.f32 -2.5052108e-08, %v716_v36  ;;  %v715_v18 = vsub.f32 %v705_v1, %v713_v16 }
 0x40f   :  { %v720_v38 = vadd.f32 2.7557319e-06, %v718_v37  ;;  %v717_v39 = vmul.f32 %v715_v18, %v715_v18 }
 0x411   :  { %v722_v40 = vmul.f32 %v720_v38, %v716_v36  ;;  %v719_v41 = vmul.f32 -2.5052108e-08, %v717_v39 }
 0x413   :  { %v724_v42 = vadd.f32 -0.0001984127, %v722_v40  ;;  %v721_v43 = vadd.f32 2.7557319e-06, %v719_v41 }
 0x415   :  { %v726_v44 = vmul.f32 %v724_v42, %v716_v36  ;;  %v723_v45 = vmul.f32 %v721_v43, %v717_v39 }
 0x417   :  { %v728_v46 = vadd.f32 0.008333334, %v726_v44  ;;  %v725_v47 = vadd.f32 -0.0001984127, %v723_v45 }
 0x419   :  { %v730_v48 = vmul.f32 %v728_v46, %v716_v36  ;;  %v727_v49 = vmul.f32 %v725_v47, %v717_v39 }
 0x41b   :  { %v732_v50 = vadd.f32 -0.16666667, %v730_v48  ;;  %v729_v51 = vadd.f32 0.008333334, %v727_v49 }
 0x41d   :  { %v734_v52 = vmul.f32 %v732_v50, %v716_v36  ;;  %v731_v53 = vmul.f32 %v729_v51, %v717_v39 }
 0x41f   :  { %v736_v54 = vadd.f32 1.0, %v734_v52  ;;  %v733_v55 = vadd.f32 -0.16666667, %v731_v53 }
 0x421   :  { %v735_v58 = vmul.f32 %v733_v55, %v717_v39  ;;  %v738_v60 = vmul.f32 %v736_v54, %v714_v34 }
 0x423   :  { %v737_v61 = vadd.f32 1.0, %v735_v58  ;;  %v740_v2 = vadd.f32 %v738_v60, %v698_v62 }
 0x425   :  { %v739_v0 = vmul.f32 %v737_v61, %v715_v18 }
 0x427   :  { %v741_v3 = vadd.f32 %v739_v0, %v699_v63 }
 0x429   :  { %v742_v4 = vpack.c.bf16 %v741_v3, %v740_v2 }
 0x42b   :  { %1046 = vmatmul.mubr.bf16.vlgmr.msra.gmra.mxu0 %v742_v4 }
 0x4eb   :  { %v848_v5 = vpop.f32.mrf.mxu0 }
 0x4ec   :  { %v849_v9 = vadd.f32 %v904_v6, %v848_v5 }
 0x4ed   :  { %v1047_v7 = vpop.f32.mrf.mxu0 }
 0x4ef   :  { %v851_v8 = vpop.f32.mrf.mxu0 }
 0x4f0   :  { %v852_v10 = vadd.f32 %v904_v6, %v851_v8 }
 0x4f1   :  { %v1048_v11 = vpop.f32.mrf.mxu0 }
 0x4f2   :  { %v920_v12 = vpack.c.bf16 %v852_v10, %v849_v9 }
 0x4f4   :  { %921 = vst [vmem:[%s1460_s12] sm:$0xff] %v920_v12  }
 0x4f5   :  { %869 = vsyncpa [#allocation3], 1 }
 0x4f6   :  { %870 = vsyncpa [#allocation7], 1 }
 0x4f7   :  { %871 = vsyncpa [#allocation10], 1 }
 0x4f8   :  { %872 = vsyncpa [#allocation13], 1 }
 0x4f9   :  { %873 = vsyncpa [#allocation4], 1 }

</bundles_post_ra>
